<compile_context>
chip_gen: v5e
topology: v5e:2x2
jax: 0.10.0
libtpu: 0.0.40
codegen_flags: <defaults>
</compile_context>

<pallas_src>
import jax
import jax.numpy as jnp
from jax.experimental import pallas as pl
from jax.experimental.pallas import tpu as pltpu

_LANE = 128


def _round_up(x, m):
    return ((x + m - 1) // m) * m


def _asinh_f32(x):
    """arcsinh from Mosaic-friendly primitives (abs/sqrt/log + sign-bit OR).

    asinh(0) == 0, so any masked/garbage padding rows only ever influence
    masked output columns.
    # TODO(synk): log1p-stable form for better *relative* error near 0 and a
    # rescaled path for |x| > ~1.8e19 (x*x overflow); fine at these tolerances.
    """
    ax = jnp.abs(x)
    mag = jnp.log(ax + jnp.sqrt(ax * ax + 1.0))
    # Reattach the sign via bit ops (cheaper than compare+select+mul on VPU).
    sign_bits = pltpu.bitcast(x, jnp.uint32) & jnp.uint32(0x80000000)
    return pltpu.bitcast(pltpu.bitcast(mag, jnp.uint32) | sign_bits, jnp.float32)


def warping_mean_kernel(x_ref, w_ref, b_ref, o_ref):
    # iwarping_fn: elementwise arcsinh (VPU + EUP), computed in f32.
    xw = _asinh_f32(x_ref[...].astype(jnp.float32))
    # mean_fn + transpose(-2, -1): contract D of W(F, D) with D of xw(tm, D)
    # -> (F, tm) tile on the MXU with f32 accumulation, so the store is
    # lane-dense along the points axis even when F is small.
    acc = jax.lax.dot_general(
        w_ref[...].astype(jnp.float32), xw,
        dimension_numbers=(((1,), (1,)), ((), ())),
        preferred_element_type=jnp.float32)
    o_ref[...] = (acc + b_ref[...].astype(jnp.float32)).astype(o_ref.dtype)


def _vmem_bytes(tm, in_dim, feat_dim, in_bytes, out_bytes):
    x_tile = tm * in_dim * in_bytes
    o_tile = feat_dim * tm * out_bytes
    w_res = feat_dim * in_dim * 4
    b_res = feat_dim * 4
    scratch = tm * in_dim * 4 + feat_dim * tm * 4   # in-kernel f32 temporaries
    # inputs/outputs are double-buffered by the BlockSpec pipeline
    return 2 * (x_tile + o_tile + w_res + b_res) + scratch


def _choose_tm(n_pts, batch, row_tile, in_dim, feat_dim, in_bytes, out_bytes):
    budget = 40 * 1024 * 1024          # working-set budget (v7x: 64 MiB VMEM)

    def vmem_ok(t):
        return _vmem_bytes(t, in_dim, feat_dim, in_bytes, out_bytes) <= budget

    # Single tile along the points axis when small, unless the grid would have
    # a single step with no batch axis (keep both TensorCores busy on v7x).
    if (n_pts <= row_tile and vmem_ok(n_pts)
            and not (batch == 1 and n_pts > 2 * _LANE)):
        return n_pts

    target = min(row_tile, n_pts)
    if batch == 1:
        target = min(target, pl.cdiv(n_pts, 2))    # >= 2 grid steps
    tm = max(_LANE, _round_up(target, _LANE))      # tiled => multiple of 128
    while tm > _LANE and not vmem_ok(tm):
        tm = max(_LANE, ((tm // 2) // _LANE) * _LANE)
    if tm >= n_pts:                                # never exceed the array dim
        tm = n_pts
    return tm


def warping_mean(x, w, b, *, row_tile=2048, interpret=False):
    """Forward of Warping_mean with iwarping_fn=arcsinh, mean_fn=Linear(w, b).

    x: (..., N, D) inputs
    w: (F, D)      weight in PyTorch nn.Linear layout
    b: (F,)        bias
    returns: (..., F, N)  ==  (arcsinh(x) @ w.T + b).transpose(-2, -1)
    """
    orig_dtype = x.dtype
    *lead, n_pts, in_dim = x.shape
    feat_dim, w_in = w.shape
    assert w_in == in_dim, (w.shape, in_dim)

    batch = 1
    for d in lead:
        batch *= d
    # Metadata-only reshapes (collapse leading dims; column bias).  No copies.
    x3 = x.reshape(batch, n_pts, in_dim)
    b2 = b.reshape(feat_dim, 1)

    in_bytes = x.dtype.itemsize
    out_bytes = jnp.dtype(orig_dtype).itemsize

    tm = _choose_tm(n_pts, batch, row_tile, in_dim, feat_dim, in_bytes, out_bytes)
    grid = (batch, pl.cdiv(n_pts, tm))

    vmem_need = _vmem_bytes(tm, in_dim, feat_dim, in_bytes, out_bytes)
    vmem_limit = int(min(60 * 1024 * 1024,
                         max(vmem_need + (4 << 20), 16 << 20)))

    total_rows = batch * n_pts
    cost = pl.CostEstimate(
        flops=2 * total_rows * in_dim * feat_dim,
        transcendentals=2 * total_rows * in_dim,          # sqrt + log per elem
        bytes_accessed=int(total_rows * in_dim * in_bytes
                           + feat_dim * in_dim * w.dtype.itemsize
                           + feat_dim * b.dtype.itemsize
                           + total_rows * feat_dim * out_bytes),
    )

    out = pl.pallas_call(
        warping_mean_kernel,
        out_shape=jax.ShapeDtypeStruct((batch, feat_dim, n_pts), orig_dtype),
        grid_spec=pl.GridSpec(
            grid=grid,
            in_specs=[
                # x tile, pipelined over (batch, points); D kept unpadded.
                pl.BlockSpec((None, tm, in_dim), lambda bi, i: (bi, i, 0)),
                # W (F, D): whole array, constant index_map -> VMEM resident.
                pl.BlockSpec((feat_dim, in_dim), lambda bi, i: (0, 0)),
                # bias as an (F, 1) column, broadcasts over the points axis.
                pl.BlockSpec((feat_dim, 1), lambda bi, i: (0, 0)),
            ],
            # Transposed (F, tm) output tile -> lane-dense stores along N.
            out_specs=pl.BlockSpec((None, feat_dim, tm),
                                   lambda bi, i: (bi, 0, i)),
        ),
        compiler_params=pltpu.CompilerParams(
            dimension_semantics=("parallel", "parallel"),
            vmem_limit_bytes=vmem_limit,
        ),
        cost_estimate=cost,
        interpret=interpret,
    )(x3, w, b2)

    # Metadata-only: split the collapsed batch dim back out.
    return out.reshape(*lead, feat_dim, n_pts)


if __name__ == "__main__":
    key = jax.random.PRNGKey(0)

    def linear_init(kw, kb, feat_dim, in_dim):
        # Deterministic nn.Linear-style init: uniform(-1/sqrt(in), 1/sqrt(in)).
        bound = 1.0 / jnp.sqrt(jnp.float32(in_dim))
        w = jax.random.uniform(kw, (feat_dim, in_dim), jnp.float32, -bound, bound)
        b = jax.random.uniform(kb, (feat_dim,), jnp.float32, -bound, bound)
        return w, b

    def reference(x, w, b):
        # Pure-JAX reference of Warping_mean.forward with the same submodules.
        return jnp.swapaxes(jnp.arcsinh(x) @ w.T + b, -2, -1)

    # Case 1: batched, tiny (batch=2, N=16, D=32, F=32) -> one tile per batch,
    # 2 "parallel" grid steps over the batch axis.
    batch, n_pts, in_dim, feat_dim = 2, 16, 32, 32
    k1, k2, k3, key = jax.random.split(key, 4)
    x = jax.random.normal(k1, (batch, n_pts, in_dim), jnp.float32)
    w, b = linear_init(k2, k3, feat_dim, in_dim)
    out = jax.block_until_ready(warping_mean(x, w, b))
    ref = reference(x, w, b)
    assert out.shape == (batch, feat_dim, n_pts), out.shape
    assert jnp.allclose(out, ref, atol=1e-4, rtol=1e-4), float(
        jnp.max(jnp.abs(out - ref)))

    # Case 2: unbatched, N=384 -> exercises the tiled path (tm=256, 2 grid
    # steps, masked partial final tile) and a small F (8).
    n_pts2, in_dim2, feat_dim2 = 384, 32, 8
    k1, k2, k3, key = jax.random.split(key, 4)
    x2 = jax.random.normal(k1, (n_pts2, in_dim2), jnp.float32)
    w2, b2 = linear_init(k2, k3, feat_dim2, in_dim2)
    out2 = jax.block_until_ready(warping_mean(x2, w2, b2))
    ref2 = reference(x2, w2, b2)
    assert out2.shape == (feat_dim2, n_pts2), out2.shape
    assert jnp.allclose(out2, ref2, atol=1e-4, rtol=1e-4), float(
        jnp.max(jnp.abs(out2 - ref2)))

    print("KERNEL_OK")
</pallas_src>

<mosaic_0001>
module attributes {stable_mosaic.version = 11 : i64} {
  func.func @warping_mean_kernel(%arg0: i32, %arg1: i32, %arg2: memref<1x16x32xf32, #tpu.memory_space<vmem>>, %arg3: memref<32x32xf32, #tpu.memory_space<vmem>>, %arg4: memref<32x1xf32, #tpu.memory_space<vmem>>, %arg5: memref<1x32x16xf32, #tpu.memory_space<vmem>>) attributes {dimension_semantics = [#tpu.dimension_semantics<parallel>, #tpu.dimension_semantics<parallel>], iteration_bounds = array<i64: 2, 1>, scalar_prefetch = 0 : i64, scratch_operands = 0 : i64, tpu.core_type = #tpu.core_type<tc>, window_params = [{transform_indices = @transform_0, window_bounds = array<i64: 1, 16, 32>}, {pipeline_mode = #tpu.pipeline_mode<synchronous>, transform_indices = @transform_1, window_bounds = array<i64: 32, 32>}, {pipeline_mode = #tpu.pipeline_mode<synchronous>, transform_indices = @transform_2, window_bounds = array<i64: 32, 1>}, {transform_indices = @transform_3, window_bounds = array<i64: 1, 32, 16>}]} {
    %c0 = arith.constant 0 : index
    %c0_0 = arith.constant 0 : index
    %c0_1 = arith.constant 0 : index
    %0 = vector.load %arg2[%c0, %c0_0, %c0_1] : memref<1x16x32xf32, #tpu.memory_space<vmem>>, vector<1x16x32xf32>
    %1 = vector.shape_cast %0 : vector<1x16x32xf32> to vector<16x32xf32>
    %2 = math.absf %1 : vector<16x32xf32>
    %3 = arith.mulf %2, %2 : vector<16x32xf32>
    %cst = arith.constant 1.000000e+00 : f32
    %4 = vector.broadcast %cst : f32 to vector<16x32xf32>
    %5 = arith.addf %3, %4 : vector<16x32xf32>
    %6 = math.sqrt %5 : vector<16x32xf32>
    %7 = arith.addf %2, %6 : vector<16x32xf32>
    %8 = math.log %7 : vector<16x32xf32>
    %9 = tpu.bitcast %1 : vector<16x32xf32> -> vector<16x32xi32>
    %c-2147483648_i32 = arith.constant -2147483648 : i32
    %10 = vector.broadcast %c-2147483648_i32 : i32 to vector<16x32xi32>
    %11 = arith.andi %9, %10 : vector<16x32xi32>
    %12 = tpu.bitcast %8 : vector<16x32xf32> -> vector<16x32xi32>
    %13 = arith.ori %12, %11 : vector<16x32xi32>
    %14 = tpu.bitcast %13 : vector<16x32xi32> -> vector<16x32xf32>
    %c0_2 = arith.constant 0 : index
    %c0_3 = arith.constant 0 : index
    %15 = vector.load %arg3[%c0_2, %c0_3] : memref<32x32xf32, #tpu.memory_space<vmem>>, vector<32x32xf32>
    %cst_4 = arith.constant dense<0.000000e+00> : vector<32x16xf32>
    %16 = tpu.matmul %15, %14, %cst_4 {dimension_numbers = #tpu.dot_dimension_numbers<[1], [1], [0], [0], [0, 0, 1, 0], [], []>} : vector<32x32xf32>, vector<16x32xf32>, vector<32x16xf32> -> vector<32x16xf32>
    %c0_5 = arith.constant 0 : index
    %c0_6 = arith.constant 0 : index
    %17 = vector.load %arg4[%c0_5, %c0_6] : memref<32x1xf32, #tpu.memory_space<vmem>>, vector<32x1xf32>
    %18 = vector.broadcast %17 : vector<32x1xf32> to vector<32x16xf32>
    %19 = arith.addf %16, %18 : vector<32x16xf32>
    %c0_7 = arith.constant 0 : index
    %c0_8 = arith.constant 0 : index
    %c0_9 = arith.constant 0 : index
    %20 = vector.load %arg5[%c0_7, %c0_8, %c0_9] : memref<1x32x16xf32, #tpu.memory_space<vmem>>, vector<1x32x16xf32>
    %21 = vector.shape_cast %20 : vector<1x32x16xf32> to vector<32x16xf32>
    %22 = vector.shape_cast %19 : vector<32x16xf32> to vector<1x32x16xf32>
    tpu.vector_store %arg5[%c0_7, %c0_8, %c0_9], %22 {strides = array<i32>} : memref<1x32x16xf32, #tpu.memory_space<vmem>>, vector<1x32x16xf32>,
    return
  }
  func.func @transform_0(%arg0: i32, %arg1: i32) -> (i32, i32, i32) {
    %c0_i32 = arith.constant 0 : i32
    %c0_i32_0 = arith.constant 0 : i32
    return %arg0, %arg1, %c0_i32 : i32, i32, i32
  }
  func.func @transform_1(%arg0: i32, %arg1: i32) -> (i32, i32) {
    %c0_i32 = arith.constant 0 : i32
    %c0_i32_0 = arith.constant 0 : i32
    %c0_i32_1 = arith.constant 0 : i32
    return %c0_i32, %c0_i32_0 : i32, i32
  }
  func.func @transform_2(%arg0: i32, %arg1: i32) -> (i32, i32) {
    %c0_i32 = arith.constant 0 : i32
    %c0_i32_0 = arith.constant 0 : i32
    %c0_i32_1 = arith.constant 0 : i32
    return %c0_i32, %c0_i32_0 : i32, i32
  }
  func.func @transform_3(%arg0: i32, %arg1: i32) -> (i32, i32, i32) {
    %c0_i32 = arith.constant 0 : i32
    %c0_i32_0 = arith.constant 0 : i32
    return %arg0, %c0_i32, %arg1 : i32, i32, i32
  }
}

</mosaic_0001>

<bundles_post_ra>
// kernel: tpu_custom_call.1
= control target key start
LH: loop header
LB: loop body
LE: loop exit
PB: predicated region body
PF: predicated region fallthrough
CT: control target
= control target key end

     0   :  { %8 = vsyncpa [#allocation3], 0  ;;  %s602_s12 = smov 0   ;;  %s604_s13 = smov 0   ;;  %s667_s0 = inlined_call_operand.vmem [shape: f32[2,16,32], index: 0, kind: input, shape index: {}]   ;;  %s668_s1 = inlined_call_operand.hbm [shape: f32[32,32], index: 1, kind: input, shape index: {}]   ;;  %s669_s2 = inlined_call_operand.vmem [shape: f32[32,1], index: 2, kind: input, shape index: {}]   ;;  %s670_s3 = inlined_call_operand.vmem [shape: f32[2,32,16], index: 3, kind: output, shape index: {}]  }
   0x1   :  { %s606_s14 = smov 0  }
   0x2 LB: > { %s445_s15 = sadd.s32 4294967295, %s576_s14   ;;  %s26_s16 = sadd.s32 1, %s572_s13  ;;  %s576_s14 = sphi %s606_s14, %s14_s14   ;;  %s572_s13 = sphi %s604_s13, %s672_s13   ;;  %s568_s12 = sphi %s602_s12, %s671_s12  }
   0x3   : > { %p28_p0 = scmp.ge.s32.totalorder %s26_s16, 2  ;;  %p447_p1 = scmp.ge.s32.totalorder %s576_s14, 1 }
   0x4   : > { %p129_p2 = scmp.lt.s32.totalorder %s576_s14, 3  ;;  %p480_p4 = scmp.eq.s32.totalorder %s445_s15, 0 }
   0x5   : > { %s674_s16 = smov (%p28_p0, %s26_s16), 0  ;;  %s140_s19 = sshll.u32 %s668_s1, 4  ;;  %s141_s19 = int_to_ptr.hbm [resolvable:$true] %s140_s19 }
   0x6   : > { %p130_p3 = pnand %p447_p1, %p129_p2  ;;  %s578_s20 = smov [#allocation2]  }
   0x7   : > { %s142_s21 = sshll.u32 %s578_s20, 4  ;;  %s579_s22 = smov 128   ;;  %s143_s21 = int_to_ptr.vmem [resolvable:$true] %s142_s21 }
   0x8   : > { %p476_p5 = pneg %p130_p3  ;;  %s580_s23 = smov 8  }
   0x9   : > { %174 = sbr.rel (%p130_p3) target bundleno = 205 (0xcd), region = 32 }
   0xa   : > { %p477_p6 = pnand %p480_p4, %p476_p5 }
   0xc   : > { %479 = dma.hbm_to_vmem [thread:$0]  (!%p477_p6), %s141_s19, 512, %s143_s21, [#allocation3], %s579_s22, %s579_s22, %s580_s23  }
   0xe   : > { %563 = dma.done.wait (%p480_p4), [#allocation3], 512  }
   0xf   : > { %565 = vsyncadd (%p480_p4), [#allocation3], 4294966784  ;;  %p207_p7 = scmp.lt.s32.totalorder %s568_s12, 1  ;;  %v581_v12 = vmov 0   ;;  %v276_v15 = vld [vmem:[%s669_s2 + $0x10] sm:$0xff]  ;;  %v274_v16 = vld [vmem:[%s669_s2] sm:$0xff] }
  0x10   : > { %511 = vset.pattern.permute.xlu1 %v581_v12  ;;  %510 = vset.pattern.permute.xlu0 %v581_v12  ;;  %v277_v24 = vld [vmem:[%s669_s2 + $0x18] sm:$0xff]  ;;  %v275_v25 = vld [vmem:[%s669_s2 + $0x8] sm:$0xff]  ;;  %vm298_vm4 = vcmask 261120   ;;  %v270_v43 = vld [vmem:[#allocation2] sm:$0xff]  ;;  %vm344_vm5 = vcmask 130048  }
  0x11   : > { %s676_s12 = smov (!%p207_p7, %s568_s12), 1  ;;  %290 = vperm.xlu1 %511, %v276_v15   ;;  %280 = vperm.xlu0 %510, %v274_v16   ;;  %v271_v44 = vld [vmem:[#allocation2 + $0x8] sm:$0xff]  ;;  %v272_v45 = vld [vmem:[#allocation2 + $0x10] sm:$0xff]  ;;  %v273_v46 = vld [vmem:[#allocation2 + $0x18] sm:$0xff] }
  0x12   : > { %s464_s24 = sshll.u32 %s676_s12, 4  ;;  %s465_s9 = sshll.u32 %s676_s12, 5 }
  0x13   : > { %s214_s27 = scalar_lea.vmem %s667_s0, %s464_s24  ;;  %s223_s15 = scalar_lea.vmem %s670_s3, %s465_s9 }
  0x14   : > { %v225_v0 = vld [vmem:[%s214_s27 + $0x8] sm:$0xff]  ;;  %v224_v1 = vld [vmem:[%s214_s27] sm:$0xff] }
  0x15   : > { %v227_v2 = vand.u32 2147483647, %v225_v0  ;;  %v226_v3 = vand.u32 2147483647, %v224_v1  ;;  %v265_v35 = vand.u32 2147483648, %v225_v0  ;;  %v264_v39 = vand.u32 2147483648, %v224_v1 }
  0x17   : > { %v229_v4 = vmul.f32 %v227_v2, %v227_v2  ;;  %v228_v5 = vmul.f32 %v226_v3, %v226_v3 }
  0x19   : > { %v231_v6 = vadd.f32 1.0, %v229_v4  ;;  %v230_v7 = vadd.f32 1.0, %v228_v5  ;;  %295 = vperm.xlu1 %511, %v277_v24   ;;  %285 = vperm.xlu0 %510, %v275_v25  }
  0x1b   : > { %512 = vrsqrt.f32 %v231_v6  ;;  %vm251_vm0 = vcmp.eq.f32.partialorder %v231_v6, inf  ;;  %v254_v22 = vand.u32 2147483648, %v231_v6  ;;  %vm253_vm1 = vcmp.eq.f32.partialorder %v231_v6, 0.0 }
  0x1c   : > { %514 = vrsqrt.f32 %v230_v7  ;;  %vm239_vm2 = vcmp.eq.f32.partialorder %v230_v7, inf  ;;  %v242_v27 = vand.u32 2147483648, %v230_v7  ;;  %vm241_vm3 = vcmp.eq.f32.partialorder %v230_v7, 0.0 }
  0x21   : > { %v513_v8 = vpop.eup %512 }
  0x22   : > { %v515_v9 = vpop.eup %514  ;;  %v245_v10 = vmul.f32 %v513_v8, %v231_v6 }
  0x23   : > { %v233_v11 = vmul.f32 %v515_v9, %v230_v7 }
  0x24   : > { %v246_v13 = vmul.f32 %v513_v8, %v245_v10 }
  0x25   : > { %v234_v14 = vmul.f32 %v515_v9, %v233_v11 }
  0x26   : > { %v247_v17 = vmul.f32 0.5, %v246_v13 }
  0x27   : > { %v235_v18 = vmul.f32 0.5, %v234_v14 }
  0x28   : > { %v248_v19 = vsub.f32 1.5, %v247_v17 }
  0x29   : > { %v236_v20 = vsub.f32 1.5, %v235_v18 }
  0x2a   : > { %v249_v21 = vmul.f32 %v513_v8, %v248_v19 }
  0x2b   : > { %v237_v23 = vmul.f32 %v515_v9, %v236_v20 }
  0x2c   : > { %v250_v26 = vmul.f32 %v249_v21, %v231_v6 }
  0x2d   : > { %v238_v28 = vmul.f32 %v237_v23, %v230_v7 }
  0x2e   : > { %v252_v29 = vsel %vm251_vm0, %v231_v6, %v250_v26 }
  0x2f   : > { %v255_v30 = vsel %vm253_vm1, %v254_v22, %v252_v29  ;;  %v240_v31 = vsel %vm239_vm2, %v230_v7, %v238_v28 }
  0x30   : > { %v257_v32 = vadd.f32 %v255_v30, %v227_v2  ;;  %v243_v33 = vsel %vm241_vm3, %v242_v27, %v240_v31 }
  0x31   : > { %v256_v34 = vadd.f32 %v243_v33, %v226_v3 }
  0x32   : > { %516 = vlog2.f32 %v257_v32 }
  0x33   : > { %518 = vlog2.f32 %v256_v34 }
  0x38   : > { %v517_v36 = vpop.eup %516 }
  0x39   : > { %v519_v37 = vpop.eup %518  ;;  %v261_v38 = vmul.f32 0.6931472, %v517_v36 }
  0x3a   : > { %v259_v40 = vmul.f32 0.6931472, %v519_v37 }
  0x3b   : > { %v269_v41 = vor.u32 %v265_v35, %v261_v38 }
  0x3c   : > { %v268_v42 = vor.u32 %v264_v39, %v259_v40 }
  0x3d   : > { %456 = vmatpush.xpose.msk.msra.mxu0 %vm298_vm4, %v269_v41  ;;  %466 = vmatpush.xpose.msk.msra.mxu1 %vm298_vm4, %v269_v41 }
  0x3e   : > { %467 = vmatpush.xpose.msk.msra.mxu2 %vm298_vm4, %v269_v41  ;;  %468 = vmatpush.xpose.msk.msra.mxu3 %vm298_vm4, %v269_v41 }
  0x41   : > { %457 = vmatpush.xpose.msk.msra.mxu0 %vm298_vm4, %v268_v42  ;;  %469 = vmatpush.xpose.msk.msra.mxu1 %vm298_vm4, %v268_v42 }
  0x42   : > { %470 = vmatpush.xpose.msk.msra.mxu2 %vm298_vm4, %v268_v42  ;;  %471 = vmatpush.xpose.msk.msra.mxu3 %vm298_vm4, %v268_v42 }
  0x44   : > { %458 = vmatmul.msk.f32.vlgmr.msra.gmra.mxu0 %vm298_vm4, %v270_v43  ;;  %459 = vmatmul.msk.f32.vlgmr.msra.gmra.mxu1 %vm298_vm4, %v271_v44 }
  0x45   : > { %460 = vmatmul.msk.f32.vlgmr.msra.gmra.mxu2 %vm298_vm4, %v272_v45  ;;  %461 = vmatmul.msk.f32.vlgmr.msra.gmra.mxu3 %vm298_vm4, %v273_v46 }
  0x83   : > { %v281_v47 = vpop.permute.xlu0 %280  ;;  %v291_v48 = vpop.permute.xlu1 %290 }
  0x8b   : > { %v286_v49 = vpop.permute.xlu0 %285  ;;  %v296_v54 = vpop.permute.xlu1 %295 }
  0xc1   : > { %v332_v50 = vpop.f32.mrf.mxu0  ;;  %v335_v51 = vpop.f32.mrf.mxu1 }
  0xc2   : > { %v333_v52 = vadd.f32 %v332_v50, %v281_v47  ;;  %v336_v53 = vadd.f32 %v335_v51, %v286_v49 }
  0xc4   : > { %345 = vst.msk [vmem:[%s223_s15] sm:$0xff] %vm344_vm5, %v333_v52 }
  0xc5   : > { %346 = vst.msk [vmem:[%s223_s15 + $0x8] sm:$0xff] %vm344_vm5, %v336_v53 }
  0xc8   : > { %v338_v55 = vpop.f32.mrf.mxu2  ;;  %v341_v56 = vpop.f32.mrf.mxu3 }
  0xc9   : > { %v339_v57 = vadd.f32 %v338_v55, %v291_v48  ;;  %v342_v58 = vadd.f32 %v341_v56, %v296_v54 }
  0xcb   : > { %347 = vst.msk [vmem:[%s223_s15 + $0x10] sm:$0xff] %vm344_vm5, %v339_v57 }
  0xcc   : > { %348 = vst.msk [vmem:[%s223_s15 + $0x18] sm:$0xff] %vm344_vm5, %v342_v58 }
  0xcd PF: > { %s14_s14 = sadd.s32 1, %s576_s14   ;;  %s671_s12 = smov %s572_s13 }
  0xce   : > { %p11_p8 = scmp.ge.s32.totalorder %s14_s14, 4   ;;  %s672_s13 = smov %s674_s16 }
  0xd0   :  { %13 = sbr.rel (!%p11_p8) target bundleno = 2 (0x2), region = 67 }
  0xd5   :  { %376 = vsyncpa [#allocation3], 1 }
  0xd6   :  { %378 = vsyncpa [#allocation3 + $0x1], 1 }

</bundles_post_ra>
